<compile_context>
chip_gen: v7x
topology: tpu7x:2x2x1
jax: 0.10.0
libtpu: 0.0.40
codegen_flags: <defaults>
</compile_context>

<pallas_src>
import functools

import jax
import jax.numpy as jnp
from jax.experimental import pallas as pl
from jax.experimental.pallas import tpu as pltpu


_VMEM_LIMIT = 48 * 1024 * 1024   # conservative: fits v7x's 64 MiB physical VMEM


def _round_up(x, m):
    return ((x + m - 1) // m) * m


# ---------------------------------------------------------------------------
# Canonical activation layout ("guarded padded-flat"):
#   [ G zeros | (H+2)*(W+2) zero-ring image, row-major | pad to LE | G zeros ]
# with channels on sublanes and the flattened spatial axis on lanes.
#   * LTOT = G + LE + G is a multiple of 128  -> lane-dense loads/stores and
#     full MXU column utilisation (matmul N = LE, multiple of 128).
#   * G >= Wp+1 (and a multiple of 128) lets a conv read all 9 taps as static
#     slices of the SAME buffer: tap (ky,kx) of output position p is input
#     position p + (ky-1)*Wp + (kx-1).
# ---------------------------------------------------------------------------
def canon_geom(h, w):
    hp, wp = h + 2, w + 2
    lc = hp * wp                      # core: zero-ring padded image, flattened
    g = _round_up(wp + 1, 128)        # guard band (covers one padded row + 1)
    le = _round_up(lc, 128)           # lane-aligned extended core
    ltot = g + le + g
    return hp, wp, lc, le, g, ltot


def to_canonical(x_nchw, dtype=jnp.bfloat16):
    n, c, h, w = x_nchw.shape
    _, _, lc, _, g, ltot = canon_geom(h, w)
    xp = jnp.pad(x_nchw.astype(dtype), ((0, 0), (0, 0), (1, 1), (1, 1)))
    xf = xp.reshape(n, c, lc)
    return jnp.pad(xf, ((0, 0), (0, 0), (g, ltot - g - lc)))


def from_canonical(xc, h, w):
    n, c, _ = xc.shape
    hp, wp, lc, _, g, _ = canon_geom(h, w)
    core = xc[:, :, g:g + lc].reshape(n, c, hp, wp)
    return core[:, :, 1:h + 1, 1:w + 1]


def interior_mask(h, w):
    """(1, LE) f32 mask: 1 at true image positions, 0 at ring / alignment pad."""
    _, wp, lc, le, _, _ = canon_geom(h, w)
    pos = jnp.arange(le, dtype=jnp.int32)
    row = pos // wp
    col = pos % wp
    m = (pos < lc) & (row >= 1) & (row <= h) & (col >= 1) & (col <= w)
    return m.astype(jnp.float32).reshape(1, le)


# ---------------------------------------------------------------------------
# In-kernel conv core: 9 accumulating K=Cin matmuls on shifted slices.
# ---------------------------------------------------------------------------
def _conv9(xg, w9, *, wp, g, le):
    """xg: (Cin, LTOT) guarded value, w9: (9, Cout, Cin).  Returns (Cout, LE) f32."""
    acc = None
    k = 0
    for ky in range(3):
        for kx in range(3):
            delta = (ky - 1) * wp + (kx - 1)
            xk = xg[:, g + delta:g + delta + le]
            p = jnp.dot(w9[k], xk, preferred_element_type=jnp.float32)
            acc = p if acc is None else acc + p
            k += 1
    return acc


def _embed_canon(core, g, ltot, dtype):
    """Re-embed a (Cout, LE) core into the full (Cout, LTOT) guarded layout."""
    cout, le = core.shape
    return jnp.concatenate(
        [jnp.zeros((cout, g), dtype),
         core.astype(dtype),
         jnp.zeros((cout, ltot - g - le), dtype)], axis=-1)


def _conv3x3_kernel(*refs, n_in, has_res, act, slope, wp, g, le):
    """Fused 3x3 conv: implicit input concat + bias + activation + residual.

    refs: x_0..x_{n_in-1} (1,Cin_t,LTOT), w_0..w_{n_in-1} (9,Cout,Cin_t),
          bias (Cout,1), mask (1,LE), [res (1,Cout,LTOT)], out (1,Cout,LTOT)
    """
    o_ref = refs[-1]
    x_refs = refs[:n_in]
    w_refs = refs[n_in:2 * n_in]
    b_ref = refs[2 * n_in]
    m_ref = refs[2 * n_in + 1]
    res_ref = refs[2 * n_in + 2] if has_res else None
    ltot = o_ref.shape[2]

    acc = None
    for t in range(n_in):
        part = _conv9(x_refs[t][0], w_refs[t][...], wp=wp, g=g, le=le)
        acc = part if acc is None else acc + part
    acc = acc + b_ref[...]                          # (Cout,1) broadcast, f32
    if act == "leaky":
        acc = jnp.where(acc >= 0.0, acc, acc * slope)
    elif act == "relu":
        acc = jnp.maximum(acc, 0.0)
    acc = acc * m_ref[...]                          # zero ring / alignment pad
    if has_res:
        acc = acc + res_ref[0][:, g:g + le].astype(jnp.float32)
    o_ref[0] = _embed_canon(acc, g, ltot, o_ref.dtype)


def _resblock_kernel(x_ref, w1_ref, b1_ref, w2_ref, b2_ref, m_ref, o_ref,
                     *, wp, g, le):
    """Fused ResidualBlockNoBN: x + conv2(relu(conv1(x))); intermediate in VMEM."""
    ltot = o_ref.shape[2]
    xv = x_ref[0]                                   # (C, LTOT) bf16
    m = m_ref[...]
    t = _conv9(xv, w1_ref[...], wp=wp, g=g, le=le) + b1_ref[...]
    t = jnp.maximum(t, 0.0) * m
    tg = _embed_canon(t, g, ltot, jnp.bfloat16)
    y = _conv9(tg, w2_ref[...], wp=wp, g=g, le=le) + b2_ref[...]
    y = y * m + xv[:, g:g + le].astype(jnp.float32)
    o_ref[0] = _embed_canon(y, g, ltot, o_ref.dtype)


# ---------------------------------------------------------------------------
# Wrappers
# ---------------------------------------------------------------------------
def conv3x3_canon(inputs, weights, bias, hw, act=None, slope=0.1,
                  residual=None, out_dtype=jnp.bfloat16):
    """3x3 same-pad conv (PyTorch cross-correlation) on canonical inputs.

    `inputs`/`weights` may be lists: the conv acts on the implicit channel
    concatenation (weights pre-split along Cin).  `residual` (canonical, same
    Cout) is added in the epilogue.
    """
    if not isinstance(inputs, (list, tuple)):
        inputs, weights = [inputs], [weights]
    h, w = hw
    _, wp, _, le, g, ltot = canon_geom(h, w)
    nb = inputs[0].shape[0]
    cout = weights[0].shape[1]
    weights = [jnp.asarray(wt).astype(jnp.bfloat16) for wt in weights]
    bias = jnp.asarray(bias).astype(jnp.float32)
    mask = interior_mask(h, w)

    n_in = len(inputs)
    in_specs = []
    for xi in inputs:
        in_specs.append(pl.BlockSpec((1, xi.shape[1], ltot), lambda i: (i, 0, 0)))
    for wt in weights:
        in_specs.append(pl.BlockSpec(wt.shape, lambda i: (0, 0, 0)))
    in_specs.append(pl.BlockSpec((cout, 1), lambda i: (0, 0)))
    in_specs.append(pl.BlockSpec((1, le), lambda i: (0, 0)))
    operands = list(inputs) + list(weights) + [bias, mask]
    if residual is not None:
        in_specs.append(pl.BlockSpec((1, cout, ltot), lambda i: (i, 0, 0)))
        operands.append(residual)

    kern = functools.partial(_conv3x3_kernel, n_in=n_in,
                             has_res=residual is not None, act=act,
                             slope=slope, wp=wp, g=g, le=le)
    return pl.pallas_call(
        kern,
        out_shape=jax.ShapeDtypeStruct((nb, cout, ltot), out_dtype),
        grid_spec=pltpu.PrefetchScalarGridSpec(
            num_scalar_prefetch=0,
            grid=(nb,),
            in_specs=in_specs,
            out_specs=pl.BlockSpec((1, cout, ltot), lambda i: (i, 0, 0)),
        ),
        compiler_params=pltpu.CompilerParams(
            dimension_semantics=("parallel",),
            vmem_limit_bytes=_VMEM_LIMIT,
        ),
    )(*operands)


def resblock_canon(x, p, hw):
    h, w = hw
    _, wp, _, le, g, ltot = canon_geom(h, w)
    nb, c, _ = x.shape
    w1 = jnp.asarray(p["w1"]).astype(jnp.bfloat16)
    w2 = jnp.asarray(p["w2"]).astype(jnp.bfloat16)
    b1 = jnp.asarray(p["b1"]).astype(jnp.float32)
    b2 = jnp.asarray(p["b2"]).astype(jnp.float32)
    mask = interior_mask(h, w)

    kern = functools.partial(_resblock_kernel, wp=wp, g=g, le=le)
    return pl.pallas_call(
        kern,
        out_shape=jax.ShapeDtypeStruct((nb, c, ltot), x.dtype),
        grid_spec=pltpu.PrefetchScalarGridSpec(
            num_scalar_prefetch=0,
            grid=(nb,),
            in_specs=[
                pl.BlockSpec((1, c, ltot), lambda i: (i, 0, 0)),
                pl.BlockSpec((9, c, c), lambda i: (0, 0, 0)),
                pl.BlockSpec((c, 1), lambda i: (0, 0)),
                pl.BlockSpec((9, c, c), lambda i: (0, 0, 0)),
                pl.BlockSpec((c, 1), lambda i: (0, 0)),
                pl.BlockSpec((1, le), lambda i: (0, 0)),
            ],
            out_specs=pl.BlockSpec((1, c, ltot), lambda i: (i, 0, 0)),
        ),
        compiler_params=pltpu.CompilerParams(
            dimension_semantics=("parallel",),
            vmem_limit_bytes=_VMEM_LIMIT,
        ),
    )(x, w1, b1, w2, b2, mask)


def conv_residual_blocks_canon(xs, p, hw):
    """nn.Conv2d -> LeakyReLU(0.1) -> N * ResidualBlockNoBN (canonical I/O).

    Multi-input: acts on the implicit channel concat of xs (weights split)."""
    if not isinstance(xs, (list, tuple)):
        xs = [xs]
    wfull = p["conv"]["w"]
    splits, off = [], 0
    for xi in xs:
        ci = xi.shape[1]
        splits.append(wfull[:, :, off:off + ci])
        off += ci
    y = conv3x3_canon(list(xs), splits, p["conv"]["b"], hw, act="leaky")
    for blk in p["blocks"]:
        y = resblock_canon(y, blk, hw)
    return y


# ---------------------------------------------------------------------------
# Plain-layout (NCHW) helpers that stay in XLA
# ---------------------------------------------------------------------------
def pixel_shuffle_nchw(x, r=2):
    n, c, h, w = x.shape
    co = c // (r * r)
    x = x.reshape(n, co, r, r, h, w)
    x = jnp.transpose(x, (0, 1, 4, 2, 5, 3))
    return x.reshape(n, co, h * r, w * r)


def flow_warp_nchw(x, flow):
    """basicsr flow_warp: bilinear grid_sample, zeros padding, align_corners=True.

    x: (n, c, h, w) (bf16 kept through the gather), flow: (n, 2, h, w) f32."""
    n, c, h, w = x.shape
    flow = flow.astype(jnp.float32)
    gy, gx = jnp.meshgrid(jnp.arange(h, dtype=jnp.float32),
                          jnp.arange(w, dtype=jnp.float32), indexing="ij")
    vx = gx[None] + flow[:, 0]
    vy = gy[None] + flow[:, 1]
    x0 = jnp.floor(vx)
    y0 = jnp.floor(vy)
    x1 = x0 + 1.0
    y1 = y0 + 1.0
    wx1 = vx - x0
    wx0 = 1.0 - wx1
    wy1 = vy - y0
    wy0 = 1.0 - wy1
    flat = x.reshape(n, c, h * w)

    def sample(xi, yi):
        valid = (xi >= 0) & (xi <= w - 1) & (yi >= 0) & (yi <= h - 1)
        xc = jnp.clip(xi, 0, w - 1).astype(jnp.int32)
        yc = jnp.clip(yi, 0, h - 1).astype(jnp.int32)
        idx = (yc * w + xc).reshape(n, 1, h * w)
        g = jnp.take_along_axis(flat, idx, axis=2).astype(jnp.float32)
        return g * valid.reshape(n, 1, h * w).astype(jnp.float32)

    out = (sample(x0, y0) * (wx0 * wy0).reshape(n, 1, h * w)
           + sample(x1, y0) * (wx1 * wy0).reshape(n, 1, h * w)
           + sample(x0, y1) * (wx0 * wy1).reshape(n, 1, h * w)
           + sample(x1, y1) * (wx1 * wy1).reshape(n, 1, h * w))
    return out.reshape(n, c, h, w)


# ---------------------------------------------------------------------------
# Parameter packing (bf16 weights / f32 biases, done once per forward)
# ---------------------------------------------------------------------------
def _prep_conv(c):
    return {"w": c["w"].astype(jnp.bfloat16), "b": c["b"].astype(jnp.float32)}


def _prep_block(bk):
    return {"w1": bk["w1"].astype(jnp.bfloat16), "b1": bk["b1"].astype(jnp.float32),
            "w2": bk["w2"].astype(jnp.bfloat16), "b2": bk["b2"].astype(jnp.float32)}


def _prep_crb(p):
    return {"conv": _prep_conv(p["conv"]),
            "blocks": [_prep_block(b) for b in p["blocks"]]}


def prep_params(params):
    return {
        "flow": _prep_conv(params["flow"]),
        "feat_extract": _prep_crb(params["feat_extract"]),
        "forward_trunk": _prep_crb(params["forward_trunk"]),
        "upconv1": _prep_conv(params["upconv1"]),
        "upconv2": _prep_conv(params["upconv2"]),
        "conv_last": _prep_conv(params["conv_last"]),
    }


# ---------------------------------------------------------------------------
# Full forward pass
# ---------------------------------------------------------------------------
def basic_univsr_forward(x, params, num_feat):
    """x: (b, n, 3, h, w) float32 (torch NCHW-per-frame convention)."""
    b, n, c, h, w = x.shape
    pp = prep_params(params)

    x_flat = x.reshape(b * n, c, h, w)
    x_can = to_canonical(x_flat)                               # (b*n, 3, L) bf16

    # --- get_flow (FastFlowNet replaced by a single conv3x3 flow head) ---
    x_can_f = x_can.reshape(b, n, c, x_can.shape[-1])
    x1_can = x_can_f[:, :-1].reshape(b * (n - 1), c, -1)
    x2_can = x_can_f[:, 1:].reshape(b * (n - 1), c, -1)
    wf = pp["flow"]["w"]
    flow_can = conv3x3_canon([x2_can, x1_can], [wf[:, :, :c], wf[:, :, c:]],
                             pp["flow"]["b"], (h, w), act=None,
                             out_dtype=jnp.float32)
    flows = from_canonical(flow_can, h, w).reshape(b, n - 1, 2, h, w)

    # --- feature extraction, batched over all frames ---
    feat_can_all = conv_residual_blocks_canon(x_can, pp["feat_extract"], (h, w))
    feat_curr_plain = from_canonical(feat_can_all, h, w).astype(jnp.float32)
    feat_curr_stack = feat_curr_plain.reshape(b, n, num_feat, h, w)
    feat_can_all = feat_can_all.reshape(b, n, num_feat, -1)

    # --- recurrent propagation (the only truly sequential part) ---
    feat_prop = jnp.zeros((b, num_feat, h, w), jnp.bfloat16)
    feat_prop_l = []
    trunk_outs = []
    for i in range(n):
        if i > 0:
            feat_prop = flow_warp_nchw(feat_prop, flows[:, i - 1]).astype(jnp.bfloat16)
        feat_prop_l.append(feat_prop.astype(jnp.float32))
        fp_can = to_canonical(feat_prop)
        fc_can = feat_can_all[:, i]
        # forward_trunk on the implicit concat([feat_curr, feat_prop], dim=C).
        y = conv_residual_blocks_canon([fc_can, fp_can], pp["forward_trunk"], (h, w))
        trunk_outs.append(y)
        feat_prop = from_canonical(y, h, w)                    # bf16 carry

    # --- reconstruction head, batched over all frames (no recurrence) ---
    trunk_can = jnp.stack(trunk_outs, axis=1).reshape(b * n, num_feat, -1)
    u1 = conv3x3_canon(trunk_can, pp["upconv1"]["w"], pp["upconv1"]["b"],
                       (h, w), act="leaky")        # lrelu commutes with shuffle
    u1 = pixel_shuffle_nchw(from_canonical(u1, h, w), 2)       # (b*n,16,2h,2w)
    u2 = conv3x3_canon(to_canonical(u1), pp["upconv2"]["w"], pp["upconv2"]["b"],
                       (2 * h, 2 * w), act="leaky")
    u2 = pixel_shuffle_nchw(from_canonical(u2, 2 * h, 2 * w), 2)  # (b*n,16,4h,4w)

    base = jax.image.resize(x_flat, (b * n, c, 4 * h, 4 * w), method="bilinear")
    base_can = to_canonical(base, dtype=jnp.float32)
    # `out += base` fused into conv_last's epilogue (residual input).
    out_can = conv3x3_canon(to_canonical(u2), pp["conv_last"]["w"],
                            pp["conv_last"]["b"], (4 * h, 4 * w), act=None,
                            residual=base_can, out_dtype=jnp.float32)
    out = from_canonical(out_can, 4 * h, 4 * w).reshape(b, n, c, 4 * h, 4 * w)

    feat_prop_stack = jnp.stack(feat_prop_l, axis=1)            # (b,n,C,h,w) f32
    return out, feat_curr_stack, feat_prop_stack, flows


# ---------------------------------------------------------------------------
# Deterministic synthetic parameters (shapes follow the torch __init__)
# ---------------------------------------------------------------------------
def init_params(seed, num_feat, num_block):
    key_box = [jax.random.PRNGKey(seed)]

    def nxt():
        key_box[0], sub = jax.random.split(key_box[0])
        return sub

    def conv_p(cin, cout, scale=1.0):
        w = jax.random.normal(nxt(), (9, cout, cin), jnp.float32) * (
            scale / float(9 * cin) ** 0.5)
        b = jax.random.normal(nxt(), (cout, 1), jnp.float32) * 0.01
        return {"w": w, "b": b}

    def res_p(nf):
        c1 = conv_p(nf, nf, scale=0.1)
        c2 = conv_p(nf, nf, scale=0.1)
        return {"w1": c1["w"], "b1": c1["b"], "w2": c2["w"], "b2": c2["b"]}

    def crb(cin, cout, nblocks):
        return {"conv": conv_p(cin, cout),
                "blocks": [res_p(cout) for _ in range(nblocks)]}

    return {
        "flow": conv_p(6, 2, scale=0.1),
        "feat_extract": crb(3, num_feat, 0),            # num_extract_block = 0
        "forward_trunk": crb(2 * num_feat, num_feat, num_block),
        "upconv1": conv_p(num_feat, 16 * 4),
        "upconv2": conv_p(16, 16 * 4),
        "conv_last": conv_p(16, 3),
    }


if __name__ == "__main__":
    # --- quick correctness checks of the two Pallas kernels vs lax.conv ---
    snap = lambda a: a.astype(jnp.bfloat16).astype(jnp.float32)

    def conv_ref_nchw(xf, w9, bias):
        cout, cin = w9.shape[1], w9.shape[2]
        w_oihw = w9.reshape(3, 3, cout, cin).transpose(2, 3, 0, 1)
        y = jax.lax.conv_general_dilated(
            xf, w_oihw, window_strides=(1, 1), padding="SAME",
            dimension_numbers=("NCHW", "OIHW", "NCHW"))
        return y + bias.reshape(1, cout, 1, 1)

    ck = jax.random.split(jax.random.PRNGKey(42), 8)
    cx = jax.random.normal(ck[0], (2, 5, 12, 20), jnp.float32)
    cw = jax.random.normal(ck[1], (9, 7, 5), jnp.float32) * 0.2
    cb = jax.random.normal(ck[2], (7, 1), jnp.float32) * 0.1
    got = from_canonical(
        conv3x3_canon(to_canonical(cx), cw, cb, (12, 20), act=None,
                      out_dtype=jnp.float32), 12, 20)
    ref = conv_ref_nchw(snap(cx), snap(cw), cb)
    err = float(jnp.max(jnp.abs(got - ref)))
    assert err < 2e-3, f"conv3x3 kernel mismatch: {err}"

    rx = jax.random.normal(ck[3], (2, 8, 12, 20), jnp.float32)
    rw1 = jax.random.normal(ck[4], (9, 8, 8), jnp.float32) * 0.05
    rb1 = jax.random.normal(ck[5], (8, 1), jnp.float32) * 0.01
    rw2 = jax.random.normal(ck[6], (9, 8, 8), jnp.float32) * 0.05
    rb2 = jax.random.normal(ck[7], (8, 1), jnp.float32) * 0.01
    blk = {"w1": rw1, "b1": rb1, "w2": rw2, "b2": rb2}
    got_rb = from_canonical(
        resblock_canon(to_canonical(rx), blk, (12, 20)), 12, 20).astype(jnp.float32)
    t_ref = jnp.maximum(conv_ref_nchw(snap(rx), snap(rw1), rb1), 0.0)
    y_ref = conv_ref_nchw(snap(t_ref), snap(rw2), rb2) + snap(rx)
    err_rb = float(jnp.max(jnp.abs(got_rb - y_ref)))
    assert err_rb < 6e-2, f"resblock kernel mismatch: {err_rb}"

    # --- full forward pass at small shapes ---
    num_feat = 32
    num_block = 2
    b, n, c, h, w = 1, 3, 3, 16, 16

    x = jax.random.uniform(jax.random.PRNGKey(0), (b, n, c, h, w), jnp.float32)
    params = init_params(0, num_feat, num_block)

    fwd = jax.jit(functools.partial(basic_univsr_forward, num_feat=num_feat))
    out_stack, feat_curr, feat_prop, flows = fwd(x, params)
    jax.block_until_ready((out_stack, feat_curr, feat_prop, flows))

    assert out_stack.shape == (b, n, 3, 4 * h, 4 * w)
    assert feat_curr.shape == (b, n, num_feat, h, w)
    assert feat_prop.shape == (b, n, num_feat, h, w)
    assert flows.shape == (b, n - 1, 2, h, w)
    print("KERNEL_OK")
</pallas_src>

<mosaic_0001>
module attributes {stable_mosaic.version = 11 : i64} {
  func.func @_conv3x3_kernel(%arg0: i32, %arg1: memref<1x5x640xbf16, #tpu.memory_space<vmem>>, %arg2: memref<9x7x5xbf16, #tpu.memory_space<vmem>>, %arg3: memref<7x1xf32, #tpu.memory_space<vmem>>, %arg4: memref<1x384xf32, #tpu.memory_space<vmem>>, %arg5: memref<1x7x640xf32, #tpu.memory_space<vmem>>) attributes {dimension_semantics = [#tpu.dimension_semantics<parallel>], iteration_bounds = array<i64: 2>, scalar_prefetch = 0 : i64, scratch_operands = 0 : i64, tpu.core_type = #tpu.core_type<tc>, window_params = [{transform_indices = @transform_0, window_bounds = array<i64: 1, 5, 640>}, {pipeline_mode = #tpu.pipeline_mode<synchronous>, transform_indices = @transform_1, window_bounds = array<i64: 9, 7, 5>}, {pipeline_mode = #tpu.pipeline_mode<synchronous>, transform_indices = @transform_2, window_bounds = array<i64: 7, 1>}, {pipeline_mode = #tpu.pipeline_mode<synchronous>, transform_indices = @transform_3, window_bounds = array<i64: 1, 384>}, {transform_indices = @transform_4, window_bounds = array<i64: 1, 7, 640>}]} {
    %c0 = arith.constant 0 : index
    %c0_0 = arith.constant 0 : index
    %c0_1 = arith.constant 0 : index
    %0 = vector.load %arg1[%c0, %c0_0, %c0_1] : memref<1x5x640xbf16, #tpu.memory_space<vmem>>, vector<1x5x640xbf16>
    %1 = vector.shape_cast %0 : vector<1x5x640xbf16> to vector<5x640xbf16>
    %c0_2 = arith.constant 0 : index
    %c0_3 = arith.constant 0 : index
    %c0_4 = arith.constant 0 : index
    %2 = vector.load %arg2[%c0_2, %c0_3, %c0_4] : memref<9x7x5xbf16, #tpu.memory_space<vmem>>, vector<9x7x5xbf16>
    %3 = vector.extract_strided_slice %1 {offsets = [0, 105], sizes = [5, 384], strides = [1, 1]} : vector<5x640xbf16> to vector<5x384xbf16>
    %4 = vector.extract_strided_slice %2 {offsets = [0, 0, 0], sizes = [1, 7, 5], strides = [1, 1, 1]} : vector<9x7x5xbf16> to vector<1x7x5xbf16>
    %5 = vector.shape_cast %4 : vector<1x7x5xbf16> to vector<7x5xbf16>
    %cst = arith.constant dense<0.000000e+00> : vector<7x384xf32>
    %6 = tpu.matmul %5, %3, %cst {dimension_numbers = #tpu.dot_dimension_numbers<[1], [0], [0], [1], [0, 0, 1, 1], [], []>} : vector<7x5xbf16>, vector<5x384xbf16>, vector<7x384xf32> -> vector<7x384xf32>
    %7 = vector.extract_strided_slice %1 {offsets = [0, 106], sizes = [5, 384], strides = [1, 1]} : vector<5x640xbf16> to vector<5x384xbf16>
    %8 = vector.extract_strided_slice %2 {offsets = [1, 0, 0], sizes = [1, 7, 5], strides = [1, 1, 1]} : vector<9x7x5xbf16> to vector<1x7x5xbf16>
    %9 = vector.shape_cast %8 : vector<1x7x5xbf16> to vector<7x5xbf16>
    %cst_5 = arith.constant dense<0.000000e+00> : vector<7x384xf32>
    %10 = tpu.matmul %9, %7, %cst_5 {dimension_numbers = #tpu.dot_dimension_numbers<[1], [0], [0], [1], [0, 0, 1, 1], [], []>} : vector<7x5xbf16>, vector<5x384xbf16>, vector<7x384xf32> -> vector<7x384xf32>
    %11 = arith.addf %6, %10 : vector<7x384xf32>
    %12 = vector.extract_strided_slice %1 {offsets = [0, 107], sizes = [5, 384], strides = [1, 1]} : vector<5x640xbf16> to vector<5x384xbf16>
    %13 = vector.extract_strided_slice %2 {offsets = [2, 0, 0], sizes = [1, 7, 5], strides = [1, 1, 1]} : vector<9x7x5xbf16> to vector<1x7x5xbf16>
    %14 = vector.shape_cast %13 : vector<1x7x5xbf16> to vector<7x5xbf16>
    %cst_6 = arith.constant dense<0.000000e+00> : vector<7x384xf32>
    %15 = tpu.matmul %14, %12, %cst_6 {dimension_numbers = #tpu.dot_dimension_numbers<[1], [0], [0], [1], [0, 0, 1, 1], [], []>} : vector<7x5xbf16>, vector<5x384xbf16>, vector<7x384xf32> -> vector<7x384xf32>
    %16 = arith.addf %11, %15 : vector<7x384xf32>
    %17 = vector.extract_strided_slice %1 {offsets = [0, 127], sizes = [5, 384], strides = [1, 1]} : vector<5x640xbf16> to vector<5x384xbf16>
    %18 = vector.extract_strided_slice %2 {offsets = [3, 0, 0], sizes = [1, 7, 5], strides = [1, 1, 1]} : vector<9x7x5xbf16> to vector<1x7x5xbf16>
    %19 = vector.shape_cast %18 : vector<1x7x5xbf16> to vector<7x5xbf16>
    %cst_7 = arith.constant dense<0.000000e+00> : vector<7x384xf32>
    %20 = tpu.matmul %19, %17, %cst_7 {dimension_numbers = #tpu.dot_dimension_numbers<[1], [0], [0], [1], [0, 0, 1, 1], [], []>} : vector<7x5xbf16>, vector<5x384xbf16>, vector<7x384xf32> -> vector<7x384xf32>
    %21 = arith.addf %16, %20 : vector<7x384xf32>
    %22 = vector.extract_strided_slice %1 {offsets = [0, 128], sizes = [5, 384], strides = [1, 1]} : vector<5x640xbf16> to vector<5x384xbf16>
    %23 = vector.extract_strided_slice %2 {offsets = [4, 0, 0], sizes = [1, 7, 5], strides = [1, 1, 1]} : vector<9x7x5xbf16> to vector<1x7x5xbf16>
    %24 = vector.shape_cast %23 : vector<1x7x5xbf16> to vector<7x5xbf16>
    %cst_8 = arith.constant dense<0.000000e+00> : vector<7x384xf32>
    %25 = tpu.matmul %24, %22, %cst_8 {dimension_numbers = #tpu.dot_dimension_numbers<[1], [0], [0], [1], [0, 0, 1, 1], [], []>} : vector<7x5xbf16>, vector<5x384xbf16>, vector<7x384xf32> -> vector<7x384xf32>
    %26 = arith.addf %21, %25 : vector<7x384xf32>
    %27 = vector.extract_strided_slice %1 {offsets = [0, 129], sizes = [5, 384], strides = [1, 1]} : vector<5x640xbf16> to vector<5x384xbf16>
    %28 = vector.extract_strided_slice %2 {offsets = [5, 0, 0], sizes = [1, 7, 5], strides = [1, 1, 1]} : vector<9x7x5xbf16> to vector<1x7x5xbf16>
    %29 = vector.shape_cast %28 : vector<1x7x5xbf16> to vector<7x5xbf16>
    %cst_9 = arith.constant dense<0.000000e+00> : vector<7x384xf32>
    %30 = tpu.matmul %29, %27, %cst_9 {dimension_numbers = #tpu.dot_dimension_numbers<[1], [0], [0], [1], [0, 0, 1, 1], [], []>} : vector<7x5xbf16>, vector<5x384xbf16>, vector<7x384xf32> -> vector<7x384xf32>
    %31 = arith.addf %26, %30 : vector<7x384xf32>
    %32 = vector.extract_strided_slice %1 {offsets = [0, 149], sizes = [5, 384], strides = [1, 1]} : vector<5x640xbf16> to vector<5x384xbf16>
    %33 = vector.extract_strided_slice %2 {offsets = [6, 0, 0], sizes = [1, 7, 5], strides = [1, 1, 1]} : vector<9x7x5xbf16> to vector<1x7x5xbf16>
    %34 = vector.shape_cast %33 : vector<1x7x5xbf16> to vector<7x5xbf16>
    %cst_10 = arith.constant dense<0.000000e+00> : vector<7x384xf32>
    %35 = tpu.matmul %34, %32, %cst_10 {dimension_numbers = #tpu.dot_dimension_numbers<[1], [0], [0], [1], [0, 0, 1, 1], [], []>} : vector<7x5xbf16>, vector<5x384xbf16>, vector<7x384xf32> -> vector<7x384xf32>
    %36 = arith.addf %31, %35 : vector<7x384xf32>
    %37 = vector.extract_strided_slice %1 {offsets = [0, 150], sizes = [5, 384], strides = [1, 1]} : vector<5x640xbf16> to vector<5x384xbf16>
    %38 = vector.extract_strided_slice %2 {offsets = [7, 0, 0], sizes = [1, 7, 5], strides = [1, 1, 1]} : vector<9x7x5xbf16> to vector<1x7x5xbf16>
    %39 = vector.shape_cast %38 : vector<1x7x5xbf16> to vector<7x5xbf16>
    %cst_11 = arith.constant dense<0.000000e+00> : vector<7x384xf32>
    %40 = tpu.matmul %39, %37, %cst_11 {dimension_numbers = #tpu.dot_dimension_numbers<[1], [0], [0], [1], [0, 0, 1, 1], [], []>} : vector<7x5xbf16>, vector<5x384xbf16>, vector<7x384xf32> -> vector<7x384xf32>
    %41 = arith.addf %36, %40 : vector<7x384xf32>
    %42 = vector.extract_strided_slice %1 {offsets = [0, 151], sizes = [5, 384], strides = [1, 1]} : vector<5x640xbf16> to vector<5x384xbf16>
    %43 = vector.extract_strided_slice %2 {offsets = [8, 0, 0], sizes = [1, 7, 5], strides = [1, 1, 1]} : vector<9x7x5xbf16> to vector<1x7x5xbf16>
    %44 = vector.shape_cast %43 : vector<1x7x5xbf16> to vector<7x5xbf16>
    %cst_12 = arith.constant dense<0.000000e+00> : vector<7x384xf32>
    %45 = tpu.matmul %44, %42, %cst_12 {dimension_numbers = #tpu.dot_dimension_numbers<[1], [0], [0], [1], [0, 0, 1, 1], [], []>} : vector<7x5xbf16>, vector<5x384xbf16>, vector<7x384xf32> -> vector<7x384xf32>
    %46 = arith.addf %41, %45 : vector<7x384xf32>
    %c0_13 = arith.constant 0 : index
    %c0_14 = arith.constant 0 : index
    %47 = vector.load %arg3[%c0_13, %c0_14] : memref<7x1xf32, #tpu.memory_space<vmem>>, vector<7x1xf32>
    %48 = vector.broadcast %47 : vector<7x1xf32> to vector<7x384xf32>
    %49 = arith.addf %46, %48 : vector<7x384xf32>
    %c0_15 = arith.constant 0 : index
    %c0_16 = arith.constant 0 : index
    %50 = vector.load %arg4[%c0_15, %c0_16] : memref<1x384xf32, #tpu.memory_space<vmem>>, vector<1x384xf32>
    %51 = vector.broadcast %50 : vector<1x384xf32> to vector<7x384xf32>
    %52 = arith.mulf %49, %51 : vector<7x384xf32>
    %cst_17 = arith.constant 0.000000e+00 : f32
    %53 = vector.broadcast %cst_17 : f32 to vector<7x128xf32>
    %cst_18 = arith.constant 0.000000e+00 : f32
    %54 = vector.broadcast %cst_18 : f32 to vector<7x128xf32>
    %55 = tpu.concatenate %53, %52, %54 in 1 : vector<7x128xf32>, vector<7x384xf32>, vector<7x128xf32> -> vector<7x640xf32>
    %c0_19 = arith.constant 0 : index
    %c0_20 = arith.constant 0 : index
    %c0_21 = arith.constant 0 : index
    %56 = vector.load %arg5[%c0_19, %c0_20, %c0_21] : memref<1x7x640xf32, #tpu.memory_space<vmem>>, vector<1x7x640xf32>
    %57 = vector.shape_cast %56 : vector<1x7x640xf32> to vector<7x640xf32>
    %58 = vector.shape_cast %55 : vector<7x640xf32> to vector<1x7x640xf32>
    tpu.vector_store %arg5[%c0_19, %c0_20, %c0_21], %58 {strides = array<i32>} : memref<1x7x640xf32, #tpu.memory_space<vmem>>, vector<1x7x640xf32>,
    return
  }
  func.func @transform_0(%arg0: i32) -> (i32, i32, i32) {
    %c0_i32 = arith.constant 0 : i32
    %c0_i32_0 = arith.constant 0 : i32
    %c0_i32_1 = arith.constant 0 : i32
    return %arg0, %c0_i32, %c0_i32_0 : i32, i32, i32
  }
  func.func @transform_1(%arg0: i32) -> (i32, i32, i32) {
    %c0_i32 = arith.constant 0 : i32
    %c0_i32_0 = arith.constant 0 : i32
    %c0_i32_1 = arith.constant 0 : i32
    %c0_i32_2 = arith.constant 0 : i32
    return %c0_i32, %c0_i32_0, %c0_i32_1 : i32, i32, i32
  }
  func.func @transform_2(%arg0: i32) -> (i32, i32) {
    %c0_i32 = arith.constant 0 : i32
    %c0_i32_0 = arith.constant 0 : i32
    %c0_i32_1 = arith.constant 0 : i32
    return %c0_i32, %c0_i32_0 : i32, i32
  }
  func.func @transform_3(%arg0: i32) -> (i32, i32) {
    %c0_i32 = arith.constant 0 : i32
    %c0_i32_0 = arith.constant 0 : i32
    %c0_i32_1 = arith.constant 0 : i32
    return %c0_i32, %c0_i32_0 : i32, i32
  }
  func.func @transform_4(%arg0: i32) -> (i32, i32, i32) {
    %c0_i32 = arith.constant 0 : i32
    %c0_i32_0 = arith.constant 0 : i32
    %c0_i32_1 = arith.constant 0 : i32
    return %arg0, %c0_i32, %c0_i32_0 : i32, i32, i32
  }
}

</mosaic_0001>

<bundles_post_ra>
// kernel: tpu_custom_call.1
= control target key start
LH: loop header
LB: loop body
LE: loop exit
PB: predicated region body
PF: predicated region fallthrough
CT: control target
= control target key end

     0   :  { %s1449_s15 = smov 0   ;;  %s1649_s0 = inlined_call_operand.vmem [shape: bf16[2,5,640], index: 0, kind: input, shape index: {}]   ;;  %s1650_s1 = inlined_call_operand.vmem [shape: bf16[9,7,5], index: 1, kind: input, shape index: {}]   ;;  %s1651_s2 = inlined_call_operand.vmem [shape: f32[7,1], index: 2, kind: input, shape index: {}]   ;;  %s1652_s3 = inlined_call_operand.vmem [shape: f32[1,384], index: 3, kind: input, shape index: {}]   ;;  %s1653_s4 = inlined_call_operand.vmem [shape: f32[2,7,640], index: 4, kind: output, shape index: {}]  }
   0x1 LB: > { %s1272_s16 = sadd.s32 4294967295, %s1410_s15   ;;  %p1276_p0 = scmp.ge.s32.totalorder %s1410_s15, 1  ;;  %s1410_s15 = sphi %s1449_s15, %s14_s15  }
   0x2   : > { %p162_p1 = scmp.lt.s32.totalorder %s1410_s15, 3 }
   0x4   : > { %p163_p2 = pnand %p1276_p0, %p162_p1 }
   0x5   : > { %p188_p3 = scmp.lt.s32.totalorder (!%p163_p2), %s1272_s16, 1  ;;  %v1412_v0 = vmov (!%p163_p2), 0.0   ;;  %vm1413_vm0 = vmmov (!%p163_p2), 0   ;;  %v1414_v3 = vmov (!%p163_p2), 0   ;;  %s1415_s21 = smov (!%p163_p2), 22   ;;  %vm237_vm1 = vcmask (!%p163_p2), 1041408  }
   0x6   : > { %166 = sbr.rel (%p163_p2) target bundleno = 430 (0x1ae), region = 36  ;;  %1322 = vmatprep.subr.bf16.mxu1 (!%p163_p2), %v1412_v0  ;;  %1324 = vmatprep.mubr.msk.bf16.mxu1 (!%p163_p2), %vm1413_vm0, %v1412_v0  ;;  %s1416_s22 = smov (!%p163_p2), 23   ;;  %v1183_v9 = vld [vmem:[%s1651_s2] sm:$0x7f] (!%p163_p2)  ;;  %vm229_vm2 = vcmask (!%p163_p2), 179200   ;;  %vm238_vm3 = vcmask (!%p163_p2), 1042432  }
   0x7   : > { %282 = vmatprep.mubr.bf16.mxu0 (!%p163_p2), %v1414_v3  ;;  %1398 = vset.pattern.permute.xlu0 (!%p163_p2), %v1414_v3  ;;  %s1417_s23 = smov (!%p163_p2), 21   ;;  %s1418_s24 = smov (!%p163_p2), 1   ;;  %v1423_v12 = vmov (!%p163_p2), 65535   ;;  %vm339_vm4 = vcmask (!%p163_p2), 187392   ;;  %v203_v25 = vld [vmem:[%s1650_s1 + $0x4] sm:$0xf] (!%p163_p2) }
   0x8   : > { %s1419_s25 = smov (!%p163_p2), 127   ;;  %s1420_s26 = smov (!%p163_p2), 107   ;;  %v239_v13 = vsel (!%p163_p2), %vm237_vm1, 4294967295, %v1423_v12  ;;  %vm233_vm5 = vcmask (!%p163_p2), 39936   ;;  %vm444_vm6 = vcmask (!%p163_p2), 171008   ;;  %vm552_vm7 = vcmask (!%p163_p2), 7168  }
   0x9   : > { %s1421_s27 = smov (!%p163_p2), 106   ;;  %s1422_s28 = smov (!%p163_p2), 105   ;;  %v1506_v17 = vsel (!%p163_p2), %vm238_vm3, %v239_v13, 0  ;;  %v202_v36 = vld [vmem:[%s1650_s1] sm:$0xf] (!%p163_p2)  ;;  %vm759_vm8 = vcmask (!%p163_p2), 1039360  }
   0xa   : > { %v204_v47 = vld [vmem:[%s1650_s1 + $0x8] sm:$0xf] (!%p163_p2)  ;;  %v205_v57 = vld [vmem:[%s1650_s1 + $0xc] sm:$0xf] (!%p163_p2)  ;;  %vm867_vm9 = vcmask (!%p163_p2), 875520   ;;  %vm975_vm10 = vcmask (!%p163_p2), 867328  }
   0xb   : > { %vm1083_vm11 = vcmask (!%p163_p2), 859136  }
   0xd   : > { %s1655_s16 = smov (!%p188_p3, %s1272_s16), 1 }
   0xe   : > { %s1376_s17 = smul.u32 20, %s1655_s16 }
  0x10   : > { %s1464_s20 = scalar_lea.vmem %s1649_s0, %s1376_s17 }
  0x11   : > { %v199_v1 = vld [vmem:[%s1464_s20] sm:$0x77]  ;;  %v200_v2 = vld [vmem:[%s1464_s20 + $0x8] sm:$0x77] }
  0x12   : > { %v1472_v4 = vcombine.high %v199_v1, %v199_v1  ;;  %v1279_v5 = vcombine.low %v199_v1, %v199_v1  ;;  %v1475_v6 = vcombine.low %v200_v2, %v200_v2  ;;  %v1477_v7 = vcombine.high %v200_v2, %v200_v2  ;;  %v1403_v8 = vld [vmem:[%s1464_s20 + $0x10] ss:$0 sps:$4 sm:$0x77]  }
  0x14   : > { %223 = vrot.lane.b32.xlu0 %v1472_v4, %s1415_s21  ;;  %221 = vrot.lane.b32.xlu1 %v1279_v5, %s1415_s21  ;;  %v659_v54 = vand.u32 %v1475_v6, %v1506_v17  ;;  %v662_v60 = vand.u32 %v1477_v7, %v1506_v17  ;;  %v656_v62 = vand.u32 %v1472_v4, %v1506_v17 }
  0x18   : > { %225 = vrot.lane.b32.xlu0 %v1475_v6, %s1415_s21  ;;  %227 = vrot.lane.b32.xlu1 %v1477_v7, %s1415_s21 }
  0x1c   : > { %333 = vrot.lane.b32.xlu0 %v1472_v4, %s1416_s22  ;;  %335 = vrot.lane.b32.xlu1 %v1475_v6, %s1416_s22 }
  0x20   : > { %331 = vrot.lane.b32.xlu0 %v1279_v5, %s1416_s22  ;;  %337 = vrot.lane.b32.xlu1 %v1477_v7, %s1416_s22 }
  0x24   : > { %438 = vrot.lane.b32.xlu0 %v1472_v4, %s1417_s23  ;;  %440 = vrot.lane.b32.xlu1 %v1475_v6, %s1417_s23 }
  0x28   : > { %436 = vrot.lane.b32.xlu0 %v1279_v5, %s1417_s23  ;;  %442 = vrot.lane.b32.xlu1 %v1477_v7, %s1417_s23 }
  0x2c   : > { %546 = vrot.lane.b32.xlu0 %v1472_v4, %s1418_s24  ;;  %548 = vrot.lane.b32.xlu1 %v1475_v6, %s1418_s24 }
  0x30   : > { %544 = vrot.lane.b32.xlu0 %v1279_v5, %s1418_s24  ;;  %550 = vrot.lane.b32.xlu1 %v1477_v7, %s1418_s24 }
  0x34   : > { %753 = vrot.lane.b32.xlu0 %v1475_v6, %s1419_s25  ;;  %755 = vrot.lane.b32.xlu1 %v1477_v7, %s1419_s25 }
  0x38   : > { %751 = vrot.lane.b32.xlu0 %v1472_v4, %s1419_s25  ;;  %757 = vrot.lane.b32.xlu1 %v1403_v8, %s1419_s25  ;;  %s1377_s25 = smul.u32 40, %s1655_s16 }
  0x3c   : > { %861 = vrot.lane.b32.xlu0 %v1475_v6, %s1420_s26  ;;  %863 = vrot.lane.b32.xlu1 %v1477_v7, %s1420_s26 }
  0x40   : > { %859 = vrot.lane.b32.xlu0 %v1472_v4, %s1420_s26  ;;  %865 = vrot.lane.b32.xlu1 %v1403_v8, %s1420_s26 }
  0x44   : > { %969 = vrot.lane.b32.xlu0 %v1475_v6, %s1421_s27  ;;  %971 = vrot.lane.b32.xlu1 %v1477_v7, %s1421_s27 }
  0x48   : > { %967 = vrot.lane.b32.xlu0 %v1472_v4, %s1421_s27  ;;  %973 = vrot.lane.b32.xlu1 %v1403_v8, %s1421_s27 }
  0x4c   : > { %1077 = vrot.lane.b32.xlu0 %v1475_v6, %s1422_s28  ;;  %1079 = vrot.lane.b32.xlu1 %v1477_v7, %s1422_s28  ;;  %v206_v7 = vld [vmem:[%s1650_s1 + $0x10] sm:$0xf] }
  0x50   : > { %1075 = vrot.lane.b32.xlu0 %v1472_v4, %s1422_s28  ;;  %1081 = vrot.lane.b32.xlu1 %v1403_v8, %s1422_s28  ;;  %s1634_s28 = scalar_lea.vmem %s1653_s4, %s1377_s25 }
  0x51   : > { %1212 = vst [vmem:[%s1634_s28] sm:$0x7f] %v1412_v0  ;;  %1216 = vst [vmem:[%s1634_s28 + $0x20] sm:$0x7f] %v1412_v0 }
  0x54   : > { %1186 = vperm.xlu0 %1398, %v1183_v9  }
  0x86   : > { %v224_v10 = vpop.permute.xlu0 %223  ;;  %v222_v11 = vpop.permute.xlu1 %221 }
  0x87   : > { %v230_v14 = vsel %vm229_vm2, %v222_v11, %v224_v10 }
  0x88   : > { %v242_v22 = vand.u32 %v1506_v17, %v230_v14 }
  0x8a   : > { %v226_v15 = vpop.permute.xlu0 %225  ;;  %v228_v16 = vpop.permute.xlu1 %227 }
  0x8b   : > { %v232_v18 = vsel %vm229_vm2, %v226_v15, %v228_v16  ;;  %v231_v19 = vsel %vm229_vm2, %v224_v10, %v226_v15 }
  0x8c   : > { %v245_v20 = vand.u32 %v1506_v17, %v231_v19  ;;  %v248_v21 = vand.u32 %v1506_v17, %v232_v18  ;;  %v207_v19 = vld [vmem:[%s1650_s1 + $0x14] sm:$0xf] }
  0x8e   : > { %250 = vmatprep.subr.bf16.mxu0 %v245_v20  ;;  %v334_v23 = vpop.permute.xlu0 %333  ;;  %1323 = vmatpush3.bf16.msra.mxu1 %v248_v21  ;;  %v336_v24 = vpop.permute.xlu1 %335 }
  0x8f   : > { %v341_v26 = vsel %vm339_vm4, %v334_v23, %v336_v24  ;;  %251 = vmatpush1.bf16.msra.mxu0 %v242_v22  ;;  %1328 = vmatprep.subr.bf16.mxu1 %v1412_v0 }
  0x90   : > { %v350_v27 = vand.u32 %v341_v26, %v1506_v17 }
  0x91   : > { %1325 = vmatmul.mubr.msk.bf16.vlgmr.msra.gmra.mrb[0].mxu1 %vm233_vm5, %v203_v25 }
  0x92   : > { %v332_v28 = vpop.permute.xlu0 %331  ;;  %1283 = vmatmul.mubr.msk.bf16.vlgmr.msra.gmra.mrb[0].mxu0 %vm233_vm5, %v203_v25  ;;  %355 = vmatprep.subr.bf16.mxu0 %v350_v27  ;;  %v338_v29 = vpop.permute.xlu1 %337 }
  0x93   : > { %v340_v30 = vsel %vm339_vm4, %v332_v28, %v334_v23  ;;  %v342_v31 = vsel %vm339_vm4, %v336_v24, %v338_v29  ;;  %1330 = vmatprep.mubr.msk.bf16.mxu1 %vm1413_vm0, %v1412_v0  ;;  %387 = vmatprep.mubr.bf16.mxu0 %v1414_v3 }
  0x94   : > { %v347_v32 = vand.u32 %v340_v30, %v1506_v17  ;;  %v353_v33 = vand.u32 %v342_v31, %v1506_v17  ;;  %v208_v30 = vld [vmem:[%s1650_s1 + $0x18] sm:$0xf] }
  0x96   : > { %v439_v34 = vpop.permute.xlu0 %438  ;;  %356 = vmatpush1.bf16.msra.mxu0 %v347_v32  ;;  %1329 = vmatpush3.bf16.msra.mxu1 %v353_v33  ;;  %v441_v35 = vpop.permute.xlu1 %440 }
  0x97   : > { %v446_v37 = vsel %vm444_vm6, %v439_v34, %v441_v35  ;;  %1334 = vmatprep.subr.bf16.mxu1 %v1412_v0 }
  0x98   : > { %v455_v38 = vand.u32 %v446_v37, %v1506_v17 }
  0x99   : > { %1331 = vmatmul.mubr.msk.bf16.vlgmr.msra.gmra.mrb[4].mxu1 %vm233_vm5, %v202_v36 }
  0x9a   : > { %v437_v39 = vpop.permute.xlu0 %436  ;;  %1285 = vmatmul.mubr.msk.bf16.vlgmr.msra.gmra.mrb[4].mxu0 %vm233_vm5, %v202_v36  ;;  %460 = vmatprep.subr.bf16.mxu0 %v455_v38  ;;  %v443_v40 = vpop.permute.xlu1 %442 }
  0x9b   : > { %v445_v41 = vsel %vm444_vm6, %v437_v39, %v439_v34  ;;  %v447_v42 = vsel %vm444_vm6, %v441_v35, %v443_v40  ;;  %1336 = vmatprep.mubr.msk.bf16.mxu1 %vm1413_vm0, %v1412_v0  ;;  %492 = vmatprep.mubr.bf16.mxu0 %v1414_v3 }
  0x9c   : > { %v452_v43 = vand.u32 %v445_v41, %v1506_v17  ;;  %v458_v44 = vand.u32 %v447_v42, %v1506_v17  ;;  %v209_v41 = vld [vmem:[%s1650_s1 + $0x1c] sm:$0xf] }
  0x9e   : > { %v547_v45 = vpop.permute.xlu0 %546  ;;  %461 = vmatpush1.bf16.msra.mxu0 %v452_v43  ;;  %1335 = vmatpush3.bf16.msra.mxu1 %v458_v44  ;;  %v549_v46 = vpop.permute.xlu1 %548  ;;  %v210_v43 = vld [vmem:[%s1650_s1 + $0x20] sm:$0xf] }
  0x9f   : > { %v554_v48 = vsel %vm552_vm7, %v547_v45, %v549_v46  ;;  %1340 = vmatprep.subr.bf16.mxu1 %v1412_v0 }
  0xa0   : > { %v563_v49 = vand.u32 %v554_v48, %v1506_v17 }
  0xa1   : > { %1337 = vmatmul.mubr.msk.bf16.vlgmr.msra.gmra.mrb[8].mxu1 %vm233_vm5, %v204_v47 }
  0xa2   : > { %v545_v50 = vpop.permute.xlu0 %544  ;;  %1287 = vmatmul.mubr.msk.bf16.vlgmr.msra.gmra.mrb[8].mxu0 %vm233_vm5, %v204_v47  ;;  %568 = vmatprep.subr.bf16.mxu0 %v563_v49  ;;  %v551_v51 = vpop.permute.xlu1 %550 }
  0xa3   : > { %v553_v52 = vsel %vm552_vm7, %v545_v50, %v547_v45  ;;  %v555_v53 = vsel %vm552_vm7, %v549_v46, %v551_v51  ;;  %1342 = vmatprep.mubr.msk.bf16.mxu1 %vm1413_vm0, %v1412_v0  ;;  %600 = vmatprep.mubr.bf16.mxu0 %v1414_v3 }
  0xa4   : > { %v560_v55 = vand.u32 %v553_v52, %v1506_v17  ;;  %v566_v56 = vand.u32 %v555_v53, %v1506_v17 }
  0xa6   : > { %569 = vmatpush1.bf16.msra.mxu0 %v560_v55  ;;  %1341 = vmatpush3.bf16.msra.mxu1 %v566_v56  ;;  %v754_v58 = vpop.permute.xlu0 %753  ;;  %v756_v59 = vpop.permute.xlu1 %755 }
  0xa7   : > { %v761_v61 = vsel %vm759_vm8, %v754_v58, %v756_v59  ;;  %664 = vmatprep.subr.bf16.mxu0 %v659_v54  ;;  %1346 = vmatprep.subr.bf16.mxu1 %v1412_v0 }
  0xa8   : > { %v770_v63 = vand.u32 %v761_v61, %v1506_v17 }
  0xa9   : > { %1343 = vmatmul.mubr.msk.bf16.vlgmr.msra.gmra.mrb[12].mxu1 %vm233_vm5, %v205_v57 }
  0xaa   : > { %1289 = vmatmul.mubr.msk.bf16.vlgmr.msra.gmra.mrb[12].mxu0 %vm233_vm5, %v205_v57  ;;  %v752_v1 = vpop.permute.xlu0 %751  ;;  %1347 = vmatpush3.bf16.msra.mxu1 %v662_v60  ;;  %v758_v2 = vpop.permute.xlu1 %757 }
  0xab   : > { %665 = vmatpush1.bf16.msra.mxu0 %v656_v62  ;;  %v762_v5 = vsel %vm759_vm8, %v756_v59, %v758_v2  ;;  %1348 = vmatprep.mubr.msk.bf16.mxu1 %vm1413_vm0, %v1412_v0  ;;  %v760_v6 = vsel %vm759_vm8, %v752_v1, %v754_v58 }
  0xac   : > { %696 = vmatprep.mubr.bf16.mxu0 %v1414_v3  ;;  %775 = vmatprep.subr.bf16.mxu0 %v770_v63  ;;  %v773_v4 = vand.u32 %v762_v5, %v1506_v17  ;;  %v767_v10 = vand.u32 %v760_v6, %v1506_v17 }
  0xad   : > { %1352 = vmatprep.subr.bf16.mxu1 %v1412_v0 }
  0xae   : > { %v862_v8 = vpop.permute.xlu0 %861  ;;  %v864_v9 = vpop.permute.xlu1 %863 }
  0xaf   : > { %v869_v11 = vsel %vm867_vm9, %v862_v8, %v864_v9 }
  0xb0   : > { %v878_v12 = vand.u32 %v869_v11, %v1506_v17 }
  0xb1   : > { %1349 = vmatmul.mubr.msk.bf16.vlgmr.msra.gmra.mrb[16].mxu1 %vm233_vm5, %v206_v7 }
  0xb2   : > { %1291 = vmatmul.mubr.msk.bf16.vlgmr.msra.gmra.mrb[16].mxu0 %vm233_vm5, %v206_v7  ;;  %1353 = vmatpush3.bf16.msra.mxu1 %v773_v4  ;;  %v860_v13 = vpop.permute.xlu0 %859  ;;  %v866_v14 = vpop.permute.xlu1 %865 }
  0xb3   : > { %776 = vmatpush1.bf16.msra.mxu0 %v767_v10  ;;  %v870_v15 = vsel %vm867_vm9, %v864_v9, %v866_v14  ;;  %1354 = vmatprep.mubr.msk.bf16.mxu1 %vm1413_vm0, %v1412_v0  ;;  %v868_v16 = vsel %vm867_vm9, %v860_v13, %v862_v8 }
  0xb4   : > { %807 = vmatprep.mubr.bf16.mxu0 %v1414_v3  ;;  %883 = vmatprep.subr.bf16.mxu0 %v878_v12  ;;  %v881_v18 = vand.u32 %v870_v15, %v1506_v17  ;;  %v875_v22 = vand.u32 %v868_v16, %v1506_v17 }
  0xb5   : > { %1358 = vmatprep.subr.bf16.mxu1 %v1412_v0 }
  0xb6   : > { %v970_v20 = vpop.permute.xlu0 %969  ;;  %v972_v21 = vpop.permute.xlu1 %971 }
  0xb7   : > { %v977_v23 = vsel %vm975_vm10, %v970_v20, %v972_v21 }
  0xb8   : > { %v986_v24 = vand.u32 %v977_v23, %v1506_v17 }
  0xb9   : > { %1355 = vmatmul.mubr.msk.bf16.vlgmr.msra.gmra.mrb[20].mxu1 %vm233_vm5, %v207_v19 }
  0xba   : > { %1294 = vmatmul.mubr.msk.bf16.vlgmr.msra.gmra.mrb[20].mxu0 %vm233_vm5, %v207_v19  ;;  %1359 = vmatpush3.bf16.msra.mxu1 %v881_v18  ;;  %v968_v25 = vpop.permute.xlu0 %967  ;;  %v974_v26 = vpop.permute.xlu1 %973 }
  0xbb   : > { %884 = vmatpush1.bf16.msra.mxu0 %v875_v22  ;;  %v978_v27 = vsel %vm975_vm10, %v972_v21, %v974_v26  ;;  %1360 = vmatprep.mubr.msk.bf16.mxu1 %vm1413_vm0, %v1412_v0  ;;  %v976_v28 = vsel %vm975_vm10, %v968_v25, %v970_v20 }
  0xbc   : > { %915 = vmatprep.mubr.bf16.mxu0 %v1414_v3  ;;  %991 = vmatprep.subr.bf16.mxu0 %v986_v24  ;;  %v989_v29 = vand.u32 %v978_v27, %v1506_v17  ;;  %v983_v33 = vand.u32 %v976_v28, %v1506_v17 }
  0xbd   : > { %1364 = vmatprep.subr.bf16.mxu1 %v1412_v0 }
  0xbe   : > { %v1078_v31 = vpop.permute.xlu0 %1077  ;;  %v1080_v32 = vpop.permute.xlu1 %1079 }
  0xbf   : > { %v1085_v34 = vsel %vm1083_vm11, %v1078_v31, %v1080_v32 }
  0xc0   : > { %v1094_v35 = vand.u32 %v1085_v34, %v1506_v17 }
  0xc1   : > { %1361 = vmatmul.mubr.msk.bf16.vlgmr.msra.gmra.mrb[24].mxu1 %vm233_vm5, %v208_v30 }
  0xc2   : > { %1296 = vmatmul.mubr.msk.bf16.vlgmr.msra.gmra.mrb[24].mxu0 %vm233_vm5, %v208_v30  ;;  %1365 = vmatpush3.bf16.msra.mxu1 %v989_v29  ;;  %v1076_v36 = vpop.permute.xlu0 %1075  ;;  %v1082_v37 = vpop.permute.xlu1 %1081 }
  0xc3   : > { %992 = vmatpush1.bf16.msra.mxu0 %v983_v33  ;;  %v1086_v38 = vsel %vm1083_vm11, %v1080_v32, %v1082_v37  ;;  %1366 = vmatprep.mubr.msk.bf16.mxu1 %vm1413_vm0, %v1412_v0  ;;  %v1084_v39 = vsel %vm1083_vm11, %v1076_v36, %v1078_v31 }
  0xc4   : > { %1023 = vmatprep.mubr.bf16.mxu0 %v1414_v3  ;;  %1099 = vmatprep.subr.bf16.mxu0 %v1094_v35  ;;  %v1097_v40 = vand.u32 %v1086_v38, %v1506_v17  ;;  %v1091_v42 = vand.u32 %v1084_v39, %v1506_v17 }
  0xc5   : > { %1370 = vmatprep.subr.bf16.mxu1 %v1412_v0 }
  0xc9   : > { %1367 = vmatmul.mubr.msk.bf16.vlgmr.msra.gmra.mrb[28].mxu1 %vm233_vm5, %v209_v41 }
  0xca   : > { %1298 = vmatmul.mubr.msk.bf16.vlgmr.msra.gmra.mrb[28].mxu0 %vm233_vm5, %v209_v41  ;;  %1371 = vmatpush3.bf16.msra.mxu1 %v1097_v40 }
  0xcb   : > { %1100 = vmatpush1.bf16.msra.mxu0 %v1091_v42  ;;  %1372 = vmatprep.mubr.msk.bf16.mxu1 %vm1413_vm0, %v1412_v0 }
  0xcc   : > { %1131 = vmatprep.mubr.bf16.mxu0 %v1414_v3 }
  0xd1   : > { %1373 = vmatmul.mubr.msk.bf16.vlgmr.msra.gmra.mrb[32].mxu1 %vm233_vm5, %v210_v43 }
  0xd2   : > { %1300 = vmatmul.mubr.msk.bf16.vlgmr.msra.gmra.mrb[32].mxu0 %vm233_vm5, %v210_v43 }
 0x164   : > { %v325_v3 = vpop.f32.mrb[0].mxu1 }
 0x165   : > { %v284_v17 = vpop.f32.mrb[0].mxu0  ;;  %v1326_v44 = vpop.f32.mrb[1].mxu1 }
 0x166   : > { %v286_v45 = vpop.f32.mrb[1].mxu0  ;;  %v328_v46 = vpop.f32.mrb[2].mxu1 }
 0x167   : > { %v288_v47 = vpop.f32.mrb[2].mxu0  ;;  %v1327_v48 = vpop.f32.mrb[3].mxu1 }
 0x168   : > { %v289_v49 = vpop.f32.mrb[3].mxu0 }
 0x16c   : > { %v430_v50 = vpop.f32.mrb[4].mxu1 }
 0x16d   : > { %v431_v51 = vadd.f32 %v430_v50, %v325_v3  ;;  %v389_v52 = vpop.f32.mrb[4].mxu0  ;;  %v1332_v53 = vpop.f32.mrb[5].mxu1 }
 0x16e   : > { %v390_v54 = vadd.f32 %v389_v52, %v284_v17  ;;  %v391_v55 = vpop.f32.mrb[5].mxu0  ;;  %v433_v56 = vpop.f32.mrb[6].mxu1  ;;  %v1194_v52 = vlaneseq }
 0x16f   : > { %v392_v57 = vadd.f32 %v391_v55, %v286_v45  ;;  %v393_v58 = vpop.f32.mrb[6].mxu0  ;;  %v1333_v59 = vpop.f32.mrb[7].mxu1 }
 0x170   : > { %v394_v60 = vpop.f32.mrb[7].mxu0 }
 0x174   : > { %v535_v0 = vpop.f32.mrb[8].mxu1 }
 0x175   : > { %v543_v61 = vadd.f32 %v535_v0, %v431_v51  ;;  %v494_v62 = vpop.f32.mrb[8].mxu0  ;;  %v1338_v63 = vpop.f32.mrb[9].mxu1 }
 0x176   : > { %v541_v1 = vadd.f32 %v494_v62, %v390_v54  ;;  %v496_v2 = vpop.f32.mrb[9].mxu0  ;;  %v538_v5 = vpop.f32.mrb[10].mxu1 }
 0x177   : > { %v542_v6 = vadd.f32 %v496_v2, %v392_v57  ;;  %v498_v4 = vpop.f32.mrb[10].mxu0  ;;  %v1339_v7 = vpop.f32.mrb[11].mxu1  ;;  %v1195_v57 = vshrl.u32 %v1194_v52, 7  ;;  %v1192_v2 = vld [vmem:[%s1652_s3] sm:$0x7] }
 0x178   : > { %v499_v8 = vpop.f32.mrb[11].mxu0  ;;  %v1187_v7 = vpop.permute.xlu0 %1186 }
 0x179   : > { %v1196_v5 = vsub.s32 0, %v1195_v57 }
 0x17c   : > { %v643_v9 = vpop.f32.mrb[12].mxu1 }
 0x17d   : > { %v651_v10 = vadd.f32 %v643_v9, %v543_v61  ;;  %v602_v11 = vpop.f32.mrb[12].mxu0  ;;  %v1344_v12 = vpop.f32.mrb[13].mxu1 }
 0x17e   : > { %v649_v13 = vadd.f32 %v602_v11, %v541_v1  ;;  %v604_v14 = vpop.f32.mrb[13].mxu0  ;;  %v646_v15 = vpop.f32.mrb[14].mxu1  ;;  %v1204_v1 = vsub.s32 2, %v1195_v57 }
 0x17f   : > { %v650_v16 = vadd.f32 %v604_v14, %v542_v6  ;;  %v606_v18 = vpop.f32.mrb[14].mxu0  ;;  %v1345_v19 = vpop.f32.mrb[15].mxu1  ;;  %v1200_v6 = vsub.s32 1, %v1195_v57 }
 0x180   : > { %v607_v20 = vpop.f32.mrb[15].mxu0 }
 0x181   : > { %v1201_v19 = vrot.slane %v1192_v2, %v1200_v6 }
 0x184   : > { %v739_v21 = vpop.f32.mrb[16].mxu1 }
 0x185   : > { %v747_v22 = vadd.f32 %v739_v21, %v651_v10  ;;  %v698_v23 = vpop.f32.mrb[16].mxu0  ;;  %v1350_v24 = vpop.f32.mrb[17].mxu1  ;;  %v1205_v10 = vrot.slane %v1192_v2, %v1204_v1 }
 0x186   : > { %v745_v25 = vadd.f32 %v698_v23, %v649_v13  ;;  %v700_v26 = vpop.f32.mrb[17].mxu0  ;;  %v742_v27 = vpop.f32.mrb[18].mxu1  ;;  %v1197_v13 = vrot.slane %v1192_v2, %v1196_v5 }
 0x187   : > { %v746_v28 = vadd.f32 %v700_v26, %v650_v16  ;;  %v702_v29 = vpop.f32.mrb[18].mxu0  ;;  %v1351_v30 = vpop.f32.mrb[19].mxu1 }
 0x188   : > { %v703_v31 = vpop.f32.mrb[19].mxu0 }
 0x18c   : > { %v850_v32 = vpop.f32.mrb[20].mxu1 }
 0x18d   : > { %v858_v33 = vadd.f32 %v850_v32, %v747_v22  ;;  %v809_v34 = vpop.f32.mrb[20].mxu0  ;;  %v1356_v35 = vpop.f32.mrb[21].mxu1 }
 0x18e   : > { %v856_v36 = vadd.f32 %v809_v34, %v745_v25  ;;  %v811_v37 = vpop.f32.mrb[21].mxu0  ;;  %v853_v38 = vpop.f32.mrb[22].mxu1 }
 0x18f   : > { %v857_v39 = vadd.f32 %v811_v37, %v746_v28  ;;  %v813_v40 = vpop.f32.mrb[22].mxu0  ;;  %v1357_v41 = vpop.f32.mrb[23].mxu1 }
 0x190   : > { %v814_v42 = vpop.f32.mrb[23].mxu0 }
 0x194   : > { %v958_v43 = vpop.f32.mrb[24].mxu1 }
 0x195   : > { %v966_v3 = vadd.f32 %v958_v43, %v858_v33  ;;  %v917_v17 = vpop.f32.mrb[24].mxu0  ;;  %v1362_v44 = vpop.f32.mrb[25].mxu1 }
 0x196   : > { %v964_v45 = vadd.f32 %v917_v17, %v856_v36  ;;  %v919_v46 = vpop.f32.mrb[25].mxu0  ;;  %v961_v47 = vpop.f32.mrb[26].mxu1 }
 0x197   : > { %v965_v48 = vadd.f32 %v919_v46, %v857_v39  ;;  %v921_v49 = vpop.f32.mrb[26].mxu0  ;;  %v1363_v50 = vpop.f32.mrb[27].mxu1 }
 0x198   : > { %v922_v51 = vpop.f32.mrb[27].mxu0 }
 0x19c   : > { %v1066_v53 = vpop.f32.mrb[28].mxu1 }
 0x19d   : > { %v1074_v54 = vadd.f32 %v1066_v53, %v966_v3  ;;  %v1025_v55 = vpop.f32.mrb[28].mxu0  ;;  %v1368_v56 = vpop.f32.mrb[29].mxu1 }
 0x19e   : > { %v1072_v58 = vadd.f32 %v1025_v55, %v964_v45  ;;  %v1027_v59 = vpop.f32.mrb[29].mxu0  ;;  %v1069_v60 = vpop.f32.mrb[30].mxu1 }
 0x19f   : > { %v1073_v0 = vadd.f32 %v1027_v59, %v965_v48  ;;  %v1029_v61 = vpop.f32.mrb[30].mxu0  ;;  %v1369_v62 = vpop.f32.mrb[31].mxu1 }
 0x1a0   : > { %v1030_v63 = vpop.f32.mrb[31].mxu0 }
 0x1a4   : > { %v1174_v4 = vpop.f32.mrb[32].mxu1 }
 0x1a5   : > { %v1182_v8 = vadd.f32 %v1174_v4, %v1074_v54  ;;  %v1133_v9 = vpop.f32.mrb[32].mxu0  ;;  %v1374_v11 = vpop.f32.mrb[33].mxu1 }
 0x1a6   : > { %v1180_v12 = vadd.f32 %v1133_v9, %v1072_v58  ;;  %v1135_v14 = vpop.f32.mrb[33].mxu0  ;;  %v1177_v15 = vpop.f32.mrb[34].mxu1 }
 0x1a7   : > { %v1191_v16 = vadd.f32 %v1187_v7, %v1182_v8  ;;  %v1181_v18 = vadd.f32 %v1135_v14, %v1073_v0  ;;  %v1137_v20 = vpop.f32.mrb[34].mxu0  ;;  %v1375_v21 = vpop.f32.mrb[35].mxu1 }
 0x1a8   : > { %v1189_v22 = vadd.f32 %v1187_v7, %v1180_v12  ;;  %v1138_v23 = vpop.f32.mrb[35].mxu0 }
 0x1a9   : > { %v1211_v24 = vmul.f32 %v1205_v10, %v1191_v16  ;;  %v1190_v25 = vadd.f32 %v1187_v7, %v1181_v18 }
 0x1aa   : > { %v1209_v26 = vmul.f32 %v1197_v13, %v1189_v22 }
 0x1ab   : > { %1215 = vst [vmem:[%s1634_s28 + $0x18] sm:$0x7f] %v1211_v24  ;;  %v1210_v27 = vmul.f32 %v1201_v19, %v1190_v25 }
 0x1ac   : > { %1213 = vst [vmem:[%s1634_s28 + $0x8] sm:$0x7f] %v1209_v26 }
 0x1ad   : > { %1214 = vst [vmem:[%s1634_s28 + $0x10] sm:$0x7f] %v1210_v27 }
 0x1ae PF: > { %s14_s15 = sadd.s32 1, %s1410_s15  }
 0x1af   : > { %p11_p4 = scmp.ge.s32.totalorder %s14_s15, 4  }
 0x1b1   :  { %13 = sbr.rel (!%p11_p4) target bundleno = 1 (0x1), region = 66 }

</bundles_post_ra>
